<compile_context>
chip_gen: v7x
topology: tpu7x:2x2x1
jax: 0.10.0
libtpu: 0.0.40
codegen_flags: <defaults>
</compile_context>

<pallas_src>
import functools

import jax
import jax.numpy as jnp
from jax import lax
from jax.experimental import pallas as pl
from jax.experimental.pallas import tpu as pltpu


_VMEM_LIMIT_BYTES = 32 * 1024 * 1024    # safe scoped-VMEM request on v5e/v6e/v7x
_PHASE1_TILE_BYTES = 8 * 1024 * 1024    # x tile budget, stats pass (2x buffered)
_PHASE2_TILE_BYTES = 6 * 1024 * 1024    # x tile budget, apply pass (in+out, 2x buffered)


def _round_up(v, u):
    return -(-v // u) * u


def _choose_tiles(N, C, HW, itemsize, budget_bytes, split_c):
    """Pick (BN, TC, THW) block dims for an (N, C, HW) layout.

    - TC: multiple of the dtype sublane unit, or full C; optionally split into
      >= 2 channel blocks so the 'parallel' channel axis can use both v7x TCs.
    - THW: multiple of 128 (lane unit) or full HW.  When HW fits within the
      lane budget the whole spatial extent is taken and the batch dim is
      folded (BN > 1, BN | N) so small feature maps still reach multi-MiB tiles.
    """
    sub = {4: 8, 2: 16, 1: 32}.get(itemsize, 8)
    budget_elems = max(budget_bytes // itemsize, sub * 128)

    # --- channel tile -------------------------------------------------------
    if C % sub != 0:
        TC = C                                   # full-extent is the only legal choice
    else:
        TC = min(C, 128)
        TC -= TC % sub
        if split_c and TC >= C and C >= 2 * sub:
            # Guarantee >= 2 channel blocks (megacore: channel is the only
            # 'parallel' axis of the stats pass).
            TC = _round_up(_round_up(C, 2) // 2, sub)

    # --- spatial / batch tile -----------------------------------------------
    lane_budget = max(budget_elems // TC, 128)
    if HW <= lane_budget:
        THW = HW                                 # full spatial extent
        BN = 1
        per_n = TC * HW
        max_bn = max(budget_elems // per_n, 1)
        for cand in range(min(N, max_bn), 0, -1):
            if N % cand == 0:                    # keep BN | N (no batch masking)
                BN = cand
                break
    else:
        BN = 1
        cap = max((lane_budget // 128) * 128, 128)
        THW = cap
        if HW % 128 == 0:
            # Prefer an exact divisor of HW (no masked last tile) unless it is
            # much smaller than the cap (e.g. HW = 128 * prime).
            t = min(cap, HW)
            while HW % t:
                t -= 128
            if 2 * t >= cap:
                THW = t

    return BN, TC, THW


def _bn_stats_kernel(x_ref, w_ref, b_ref, scale_ref, shift_ref,
                     sum_acc, sq_acc, *, eps, m, hw_total, thw, mask_hw):
    """Phase 1: per-channel scale/shift from streamed batch statistics.

    x_ref:               (BN, TC, THW) tile of x laid out as (N, C, H*W)
    w_ref / b_ref:       (TC, 1) per-channel affine params (tiny, resident)
    scale_ref/shift_ref: (TC, 1) outputs, written on the last reduction step
    sum_acc / sq_acc:    (TC, 1) f32 accumulators (tiny -> no vst pressure)
    """
    n_i = pl.program_id(1)
    hw_i = pl.program_id(2)

    @pl.when(jnp.logical_and(n_i == 0, hw_i == 0))
    def _init():
        sum_acc[...] = jnp.zeros_like(sum_acc)
        sq_acc[...] = jnp.zeros_like(sq_acc)

    x = x_ref[...].astype(jnp.float32)           # (BN, TC, THW)
    if mask_hw:
        # The last HW tile may run past HW; zero the padding lanes before any
        # arithmetic so garbage never reaches the sums.
        rem = hw_total - hw_i * thw
        lane = lax.broadcasted_iota(jnp.int32, x.shape, dimension=2)
        x = jnp.where(lane < rem, x, 0.0)

    # Per-tile partial reduction (lane reduce on the XLU, which is otherwise
    # idle); only (TC, 1) partials are accumulated / stored in VMEM.
    sum_acc[...] += jnp.sum(jnp.sum(x, axis=2, keepdims=True), axis=0)
    sq_acc[...] += jnp.sum(jnp.sum(x * x, axis=2, keepdims=True), axis=0)

    @pl.when(jnp.logical_and(n_i == pl.num_programs(1) - 1,
                             hw_i == pl.num_programs(2) - 1))
    def _finalize():
        s = sum_acc[...]                         # (TC, 1)
        mean = s * (1.0 / m)
        # Unbiased variance (torch.var default, correction=1).  Clamp against
        # catastrophic cancellation driving it slightly negative.
        var = (sq_acc[...] - mean * s) * (1.0 / max(m - 1, 1))
        var = jnp.maximum(var, 0.0)
        inv_std = lax.rsqrt(var + eps)           # 1/sqrt(eps + var)
        w = w_ref[...].astype(jnp.float32)
        b = b_ref[...].astype(jnp.float32)
        scale = w * inv_std
        scale_ref[...] = scale
        shift_ref[...] = b - mean * scale


def _bn_apply_kernel(x_ref, scale_ref, shift_ref, o_ref):
    """Phase 2: y = x * scale + shift (per channel), pure streaming FMA."""
    x = x_ref[...].astype(jnp.float32)           # (BN, TC, THW)
    scale = scale_ref[...]                        # (TC, 1) broadcasts on BN/lanes
    shift = shift_ref[...]
    o_ref[...] = (x * scale + shift).astype(o_ref.dtype)


def batch_normalization_2d(x, weight, bias, eps=1e-5):
    """x: (N, C, H, W); weight/bias: (C,). Returns (N, C, H, W)."""
    N, C, H, W = x.shape
    HW = H * W
    M = N * HW
    itemsize = jnp.dtype(x.dtype).itemsize

    # Free reshape: NCHW -> (N, C, HW); H*W stays lane-dense, no transposes.
    x3 = x.reshape(N, C, HW)
    w2 = weight.reshape(C, 1).astype(jnp.float32)
    b2 = bias.reshape(C, 1).astype(jnp.float32)

    # ---- Phase 1: per-channel scale & shift --------------------------------
    BN1, TC1, THW1 = _choose_tiles(N, C, HW, itemsize, _PHASE1_TILE_BYTES,
                                   split_c=True)
    grid1 = (pl.cdiv(C, TC1), N // BN1, pl.cdiv(HW, THW1))
    mask_hw = (HW % THW1) != 0

    scale, shift = pl.pallas_call(
        functools.partial(_bn_stats_kernel, eps=float(eps), m=M,
                          hw_total=HW, thw=THW1, mask_hw=mask_hw),
        out_shape=(jax.ShapeDtypeStruct((C, 1), jnp.float32),
                   jax.ShapeDtypeStruct((C, 1), jnp.float32)),
        grid_spec=pltpu.PrefetchScalarGridSpec(
            num_scalar_prefetch=0,
            grid=grid1,
            in_specs=[
                pl.BlockSpec((BN1, TC1, THW1), lambda c, n, hw: (n, c, hw)),
                pl.BlockSpec((TC1, 1), lambda c, n, hw: (c, 0)),
                pl.BlockSpec((TC1, 1), lambda c, n, hw: (c, 0)),
            ],
            out_specs=[
                pl.BlockSpec((TC1, 1), lambda c, n, hw: (c, 0)),
                pl.BlockSpec((TC1, 1), lambda c, n, hw: (c, 0)),
            ],
            scratch_shapes=[pltpu.VMEM((TC1, 1), jnp.float32),
                            pltpu.VMEM((TC1, 1), jnp.float32)],
        ),
        compiler_params=pltpu.CompilerParams(
            dimension_semantics=("parallel", "arbitrary", "arbitrary"),
            vmem_limit_bytes=_VMEM_LIMIT_BYTES),
    )(x3, w2, b2)

    # ---- Phase 2: normalize + affine (single FMA per element) --------------
    BN2, TC2, THW2 = _choose_tiles(N, C, HW, itemsize, _PHASE2_TILE_BYTES,
                                   split_c=False)
    grid2 = (pl.cdiv(C, TC2), N // BN2, pl.cdiv(HW, THW2))

    y3 = pl.pallas_call(
        _bn_apply_kernel,
        out_shape=jax.ShapeDtypeStruct((N, C, HW), x.dtype),
        grid_spec=pltpu.PrefetchScalarGridSpec(
            num_scalar_prefetch=0,
            grid=grid2,
            in_specs=[
                pl.BlockSpec((BN2, TC2, THW2), lambda c, n, hw: (n, c, hw)),
                pl.BlockSpec((TC2, 1), lambda c, n, hw: (c, 0)),
                pl.BlockSpec((TC2, 1), lambda c, n, hw: (c, 0)),
            ],
            out_specs=pl.BlockSpec((BN2, TC2, THW2),
                                   lambda c, n, hw: (n, c, hw)),
        ),
        compiler_params=pltpu.CompilerParams(
            dimension_semantics=("parallel", "parallel", "parallel"),
            vmem_limit_bytes=_VMEM_LIMIT_BYTES),
    )(x3, scale, shift)

    # TODO(synk): running_mean / running_var momentum updates are a training-
    # time buffer side effect that does not change the forward output; not
    # materialized here.
    return y3.reshape(N, C, H, W)


if __name__ == "__main__":
    key = jax.random.PRNGKey(0)
    N, C, H, W = 2, 4, 16, 16

    x = jax.random.normal(key, (N, C, H, W), dtype=jnp.float32)
    # Deterministic parameter init matching the module's __init__:
    weight = jnp.ones((C,), dtype=jnp.float32)
    bias = jnp.zeros((C,), dtype=jnp.float32)

    out = batch_normalization_2d(x, weight, bias, eps=1e-5)
    jax.block_until_ready(out)

    # Pure-JAX reference (unbiased variance, batch-stats branch).
    mean = jnp.mean(x, axis=(0, 2, 3), keepdims=True)
    var = jnp.sum((x - mean) ** 2, axis=(0, 2, 3), keepdims=True) / (N * H * W - 1)
    ref = (x - mean) / jnp.sqrt(1e-5 + var)
    ref = ref * weight[None, :, None, None] + bias[None, :, None, None]
    assert jnp.allclose(out, ref, atol=1e-5, rtol=1e-5), "mismatch vs reference"

    print("KERNEL_OK")
</pallas_src>

<mosaic_0001>
module attributes {stable_mosaic.version = 11 : i64} {
  func.func @_bn_stats_kernel(%arg0: i32, %arg1: i32, %arg2: i32, %arg3: memref<2x4x256xf32, #tpu.memory_space<vmem>>, %arg4: memref<4x1xf32, #tpu.memory_space<vmem>>, %arg5: memref<4x1xf32, #tpu.memory_space<vmem>>, %arg6: memref<4x1xf32, #tpu.memory_space<vmem>>, %arg7: memref<4x1xf32, #tpu.memory_space<vmem>>, %arg8: memref<4x1xf32, #tpu.memory_space<vmem>>, %arg9: memref<4x1xf32, #tpu.memory_space<vmem>>) attributes {dimension_semantics = [#tpu.dimension_semantics<parallel>, #tpu.dimension_semantics<arbitrary>, #tpu.dimension_semantics<arbitrary>], iteration_bounds = array<i64: 1, 1, 1>, scalar_prefetch = 0 : i64, scratch_operands = 2 : i64, tpu.core_type = #tpu.core_type<tc>, window_params = [{transform_indices = @transform_0, window_bounds = array<i64: 2, 4, 256>}, {transform_indices = @transform_1, window_bounds = array<i64: 4, 1>}, {transform_indices = @transform_2, window_bounds = array<i64: 4, 1>}, {transform_indices = @transform_3, window_bounds = array<i64: 4, 1>}, {transform_indices = @transform_4, window_bounds = array<i64: 4, 1>}]} {
    %c0_i32 = arith.constant 0 : i32
    %0 = arith.cmpi eq, %arg1, %c0_i32 : i32
    %c0_i32_0 = arith.constant 0 : i32
    %1 = arith.cmpi eq, %arg2, %c0_i32_0 : i32
    %2 = arith.andi %0, %1 : i1
    %3 = arith.extui %2 : i1 to i32
    %c0_i32_1 = arith.constant 0 : i32
    %4 = arith.cmpi ne, %3, %c0_i32_1 : i32
    scf.if %4 {
      %cst_18 = arith.constant 0.000000e+00 : f32
      %24 = vector.broadcast %cst_18 : f32 to vector<4x1xf32>
      %c0_19 = arith.constant 0 : index
      %c0_20 = arith.constant 0 : index
      %25 = vector.load %arg8[%c0_19, %c0_20] : memref<4x1xf32, #tpu.memory_space<vmem>>, vector<4x1xf32>
      tpu.vector_store %arg8[%c0_19, %c0_20], %24 {strides = array<i32>} : memref<4x1xf32, #tpu.memory_space<vmem>>, vector<4x1xf32>,
      %cst_21 = arith.constant 0.000000e+00 : f32
      %26 = vector.broadcast %cst_21 : f32 to vector<4x1xf32>
      %c0_22 = arith.constant 0 : index
      %c0_23 = arith.constant 0 : index
      %27 = vector.load %arg9[%c0_22, %c0_23] : memref<4x1xf32, #tpu.memory_space<vmem>>, vector<4x1xf32>
      tpu.vector_store %arg9[%c0_22, %c0_23], %26 {strides = array<i32>} : memref<4x1xf32, #tpu.memory_space<vmem>>, vector<4x1xf32>,
    } else {
    }
    %c0 = arith.constant 0 : index
    %c0_2 = arith.constant 0 : index
    %c0_3 = arith.constant 0 : index
    %5 = vector.load %arg3[%c0, %c0_2, %c0_3] : memref<2x4x256xf32, #tpu.memory_space<vmem>>, vector<2x4x256xf32>
    %c0_4 = arith.constant 0 : index
    %c0_5 = arith.constant 0 : index
    %6 = vector.load %arg8[%c0_4, %c0_5] : memref<4x1xf32, #tpu.memory_space<vmem>>, vector<4x1xf32>
    %cst = arith.constant dense<0.000000e+00> : vector<2x4xf32>
    %7 = vector.multi_reduction <add>, %5, %cst [2] : vector<2x4x256xf32> to vector<2x4xf32>
    %8 = vector.shape_cast %7 : vector<2x4xf32> to vector<2x4x1xf32>
    %cst_6 = arith.constant dense<0.000000e+00> : vector<4x1xf32>
    %9 = vector.multi_reduction <add>, %8, %cst_6 [0] : vector<2x4x1xf32> to vector<4x1xf32>
    %10 = arith.addf %6, %9 : vector<4x1xf32>
    %c0_7 = arith.constant 0 : index
    %c0_8 = arith.constant 0 : index
    %11 = vector.load %arg8[%c0_7, %c0_8] : memref<4x1xf32, #tpu.memory_space<vmem>>, vector<4x1xf32>
    tpu.vector_store %arg8[%c0_7, %c0_8], %10 {strides = array<i32>} : memref<4x1xf32, #tpu.memory_space<vmem>>, vector<4x1xf32>,
    %c0_9 = arith.constant 0 : index
    %c0_10 = arith.constant 0 : index
    %12 = vector.load %arg9[%c0_9, %c0_10] : memref<4x1xf32, #tpu.memory_space<vmem>>, vector<4x1xf32>
    %13 = arith.mulf %5, %5 : vector<2x4x256xf32>
    %cst_11 = arith.constant dense<0.000000e+00> : vector<2x4xf32>
    %14 = vector.multi_reduction <add>, %13, %cst_11 [2] : vector<2x4x256xf32> to vector<2x4xf32>
    %15 = vector.shape_cast %14 : vector<2x4xf32> to vector<2x4x1xf32>
    %cst_12 = arith.constant dense<0.000000e+00> : vector<4x1xf32>
    %16 = vector.multi_reduction <add>, %15, %cst_12 [0] : vector<2x4x1xf32> to vector<4x1xf32>
    %17 = arith.addf %12, %16 : vector<4x1xf32>
    %c0_13 = arith.constant 0 : index
    %c0_14 = arith.constant 0 : index
    %18 = vector.load %arg9[%c0_13, %c0_14] : memref<4x1xf32, #tpu.memory_space<vmem>>, vector<4x1xf32>
    tpu.vector_store %arg9[%c0_13, %c0_14], %17 {strides = array<i32>} : memref<4x1xf32, #tpu.memory_space<vmem>>, vector<4x1xf32>,
    %c0_i32_15 = arith.constant 0 : i32
    %19 = arith.cmpi eq, %arg1, %c0_i32_15 : i32
    %c0_i32_16 = arith.constant 0 : i32
    %20 = arith.cmpi eq, %arg2, %c0_i32_16 : i32
    %21 = arith.andi %19, %20 : i1
    %22 = arith.extui %21 : i1 to i32
    %c0_i32_17 = arith.constant 0 : i32
    %23 = arith.cmpi ne, %22, %c0_i32_17 : i32
    scf.if %23 {
      %c0_18 = arith.constant 0 : index
      %c0_19 = arith.constant 0 : index
      %24 = vector.load %arg8[%c0_18, %c0_19] : memref<4x1xf32, #tpu.memory_space<vmem>>, vector<4x1xf32>
      %cst_20 = arith.constant 0.001953125 : f32
      %25 = vector.broadcast %cst_20 : f32 to vector<4x1xf32>
      %26 = arith.mulf %24, %25 : vector<4x1xf32>
      %c0_21 = arith.constant 0 : index
      %c0_22 = arith.constant 0 : index
      %27 = vector.load %arg9[%c0_21, %c0_22] : memref<4x1xf32, #tpu.memory_space<vmem>>, vector<4x1xf32>
      %28 = arith.mulf %26, %24 : vector<4x1xf32>
      %29 = arith.subf %27, %28 : vector<4x1xf32>
      %cst_23 = arith.constant 0.00195694715 : f32
      %30 = vector.broadcast %cst_23 : f32 to vector<4x1xf32>
      %31 = arith.mulf %29, %30 : vector<4x1xf32>
      %cst_24 = arith.constant 0.000000e+00 : f32
      %32 = vector.broadcast %cst_24 : f32 to vector<4x1xf32>
      %33 = arith.maximumf %31, %32 : vector<4x1xf32>
      %cst_25 = arith.constant 9.99999974E-6 : f32
      %34 = vector.broadcast %cst_25 : f32 to vector<4x1xf32>
      %35 = arith.addf %33, %34 : vector<4x1xf32>
      %36 = math.rsqrt %35 : vector<4x1xf32>
      %c0_26 = arith.constant 0 : index
      %c0_27 = arith.constant 0 : index
      %37 = vector.load %arg4[%c0_26, %c0_27] : memref<4x1xf32, #tpu.memory_space<vmem>>, vector<4x1xf32>
      %c0_28 = arith.constant 0 : index
      %c0_29 = arith.constant 0 : index
      %38 = vector.load %arg5[%c0_28, %c0_29] : memref<4x1xf32, #tpu.memory_space<vmem>>, vector<4x1xf32>
      %39 = arith.mulf %37, %36 : vector<4x1xf32>
      %c0_30 = arith.constant 0 : index
      %c0_31 = arith.constant 0 : index
      %40 = vector.load %arg6[%c0_30, %c0_31] : memref<4x1xf32, #tpu.memory_space<vmem>>, vector<4x1xf32>
      tpu.vector_store %arg6[%c0_30, %c0_31], %39 {strides = array<i32>} : memref<4x1xf32, #tpu.memory_space<vmem>>, vector<4x1xf32>,
      %41 = arith.mulf %26, %39 : vector<4x1xf32>
      %42 = arith.subf %38, %41 : vector<4x1xf32>
      %c0_32 = arith.constant 0 : index
      %c0_33 = arith.constant 0 : index
      %43 = vector.load %arg7[%c0_32, %c0_33] : memref<4x1xf32, #tpu.memory_space<vmem>>, vector<4x1xf32>
      tpu.vector_store %arg7[%c0_32, %c0_33], %42 {strides = array<i32>} : memref<4x1xf32, #tpu.memory_space<vmem>>, vector<4x1xf32>,
    } else {
    }
    return
  }
  func.func @transform_0(%arg0: i32, %arg1: i32, %arg2: i32) -> (i32, i32, i32) {
    %c0_i32 = arith.constant 0 : i32
    return %arg1, %arg0, %arg2 : i32, i32, i32
  }
  func.func @transform_1(%arg0: i32, %arg1: i32, %arg2: i32) -> (i32, i32) {
    %c0_i32 = arith.constant 0 : i32
    %c0_i32_0 = arith.constant 0 : i32
    return %arg0, %c0_i32 : i32, i32
  }
  func.func @transform_2(%arg0: i32, %arg1: i32, %arg2: i32) -> (i32, i32) {
    %c0_i32 = arith.constant 0 : i32
    %c0_i32_0 = arith.constant 0 : i32
    return %arg0, %c0_i32 : i32, i32
  }
  func.func @transform_3(%arg0: i32, %arg1: i32, %arg2: i32) -> (i32, i32) {
    %c0_i32 = arith.constant 0 : i32
    %c0_i32_0 = arith.constant 0 : i32
    return %arg0, %c0_i32 : i32, i32
  }
  func.func @transform_4(%arg0: i32, %arg1: i32, %arg2: i32) -> (i32, i32) {
    %c0_i32 = arith.constant 0 : i32
    %c0_i32_0 = arith.constant 0 : i32
    return %arg0, %c0_i32 : i32, i32
  }
}

</mosaic_0001>

<bundles_post_ra>
// kernel: tpu_custom_call.1
= control target key start
LH: loop header
LB: loop body
LE: loop exit
PB: predicated region body
PF: predicated region fallthrough
CT: control target
= control target key end

     0   :  { %10 = vsyncpa [#allocation5], 0  ;;  %s148_s15 = smov [#allocation4]   ;;  %s219_s0 = inlined_call_operand.hbm [shape: f32[2,4,256], index: 0, kind: input, shape index: {}]   ;;  %s220_s1 = inlined_call_operand.vmem [shape: f32[4,1], index: 1, kind: input, shape index: {}]   ;;  %s221_s2 = inlined_call_operand.vmem [shape: f32[4,1], index: 2, kind: input, shape index: {}]   ;;  %s222_s3 = inlined_call_operand.vmem [shape: f32[4,1], index: 3, kind: output, shape index: {0}]   ;;  %s223_s4 = inlined_call_operand.vmem [shape: f32[4,1], index: 4, kind: output, shape index: {1}]  }
   0x1   :  { %s16_s16 = sshll.u32 %s148_s15, 4  ;;  %s124_s19 = scalar_lea.hbm %s219_s0, 256  ;;  %s17_s16 = int_to_ptr.vmem [resolvable:$true] %s16_s16 }
   0x2   :  { %p125_p0 = scmp.ne.s32.totalorder %s219_s0, %s124_s19  ;;  %p128_p1 = scmp.lt.u32.totalorder %s124_s19, %s219_s0 }
   0x4   :  { %p130_p2 = pnand %p128_p1, %p125_p0 }
   0x6   :  { %133 = shalt.err (!%p130_p2)
}
   0x7   :  { %s134_s24 = scalar_lea.vmem %s17_s16, 256  ;;  %p139_p4 = scmp.lt.s32.totalorder %s17_s16, %s17_s16 }
   0x8   :  { %p135_p3 = scmp.ne.s32.totalorder %s17_s16, %s134_s24  ;;  %p140_p5 = scmp.lt.s32.totalorder %s134_s24, %s134_s24 }
   0xa   :  { %p141_p6 = por %p140_p5, %p139_p4 }
   0xc   :  { %p142_p7 = pnand %p141_p6, %p135_p3 }
   0xe   :  { %145 = shalt.err (!%p142_p7)
}
   0xf   :  { %s149_s25 = smov 128   ;;  %s150_s26 = smov 8  }
  0x10   :  { %22 = dma.hbm_to_vmem [thread:$0]  %s219_s0, 256, %s17_s16, [#allocation5], %s149_s25, %s149_s25, %s150_s26  }
  0x11   :  { %146 = dma.done.wait [#allocation5], 256  }
  0x12   :  { %147 = vsyncadd [#allocation5], 4294967040  ;;  %vm48_vm0 = vcmask 1043456   ;;  %v39_v0 = vld [vmem:[#allocation4] sm:$0xff]  ;;  %v40_v1 = vld [vmem:[#allocation4 + $0x8] sm:$0xff]  ;;  %vm36_vm1 = vcmask 3072  }
  0x13   :  { %v44_v2 = vcombine.high %v39_v0, %v39_v0  ;;  %v49_v3 = vsel %vm48_vm0, %v39_v0, 0.0  ;;  %v66_v4 = vmul.f32 %v39_v0, %v39_v0  ;;  %v45_v5 = vcombine.high %v40_v1, %v40_v1  ;;  %v100_v43 = vld [vmem:[%s220_s1] sm:$0xf] }
  0x14   :  { %v54_v6 = vsel %vm48_vm0, %v40_v1, 0.0  ;;  %v67_v7 = vmul.f32 %v40_v1, %v40_v1  ;;  %v151_v20 = vmov 0.0   ;;  %v101_v46 = vld [vmem:[%s221_s2] sm:$0xf] }
  0x15   :  { %v50_v8 = vsel %vm48_vm0, %v44_v2, 0.0  ;;  %v70_v9 = vcombine.high %v66_v4, %v66_v4  ;;  %v74_v10 = vsel %vm48_vm0, %v66_v4, 0.0  ;;  %v55_v11 = vsel %vm48_vm0, %v45_v5, 0.0  ;;  %37 = vst.msk [vmem:[#allocation2] sm:$0xf] %vm36_vm1, %v151_v20 }
  0x16   :  { %v51_v12 = vadd.f32 %v50_v8, %v49_v3  ;;  %v71_v13 = vcombine.high %v67_v7, %v67_v7  ;;  %v79_v15 = vsel %vm48_vm0, %v67_v7, 0.0  ;;  %v56_v17 = vadd.f32 %v55_v11, %v54_v6  ;;  %38 = vst.msk [vmem:[#allocation3] sm:$0xf] %vm36_vm1, %v151_v20 }
  0x17   :  { %v75_v14 = vsel %vm48_vm0, %v70_v9, 0.0 }
  0x18   :  { %52 = vadd.xlane.f32.xlu0 %v51_v12  ;;  %v76_v16 = vadd.f32 %v75_v14, %v74_v10  ;;  %v80_v18 = vsel %vm48_vm0, %v71_v13, 0.0 }
  0x19   :  { %v81_v19 = vadd.f32 %v80_v18, %v79_v15 }
  0x1a   :  { %77 = vadd.xlane.f32.xlu1 %v76_v16 }
  0x1c   :  { %57 = vadd.xlane.f32.xlu0 %v56_v17  ;;  %v41_v25 = vld [vmem:[#allocation2] sm:$0xf] }
  0x1d   :  { %v65_v30 = vld [vmem:[#allocation3] sm:$0xf] }
  0x1e   :  { %82 = vadd.xlane.f32.xlu1 %v81_v19 }
  0xa5   :  { %v53_v21 = vpop.xlane.xlu0 %52 }
  0xa6   :  { %v59_v24 = vsel %vm48_vm0, %v53_v21, 0.0 }
  0xa7   :  { %v78_v22 = vpop.xlane.xlu1 %77 }
  0xa8   :  { %v84_v29 = vsel %vm48_vm0, %v78_v22, 0.0 }
  0xa9   :  { %v58_v23 = vpop.xlane.xlu0 %57 }
  0xaa   :  { %v60_v26 = vsel %vm48_vm0, %v58_v23, 0.0 }
  0xab   :  { %v61_v27 = vadd.f32 %v60_v26, %v59_v24  ;;  %v83_v28 = vpop.xlane.xlu1 %82 }
  0xac   :  { %v85_v31 = vsel %vm48_vm0, %v83_v28, 0.0 }
  0xad   :  { %v62_v32 = vadd.f32 %v61_v27, %v41_v25  ;;  %v86_v33 = vadd.f32 %v85_v31, %v84_v29 }
  0xaf   :  { %64 = vst.msk [vmem:[#allocation2] sm:$0xf] %vm36_vm1, %v62_v32  ;;  %v87_v34 = vadd.f32 %v86_v33, %v65_v30 }
  0xb1   :  { %88 = vst.msk [vmem:[#allocation3] sm:$0xf] %vm36_vm1, %v87_v34 }
  0xb6   :  { %v91_v35 = vld [vmem:[#allocation2] sm:$0xf] }
  0xb7   :  { %v92_v36 = vmul.f32 0.001953125, %v91_v35 }
  0xb8   :  { %v93_v38 = vld [vmem:[#allocation3] sm:$0xf] }
  0xb9   :  { %v94_v37 = vmul.f32 %v92_v36, %v91_v35 }
  0xbb   :  { %v95_v39 = vsub.f32 %v93_v38, %v94_v37 }
  0xbd   :  { %v96_v40 = vmul.f32 0.0019569471, %v95_v39 }
  0xbf   :  { %v97_v41 = vmax.f32 %v96_v40, 0.0 }
  0xc1   :  { %v98_v42 = vadd.f32 1e-05, %v97_v41 }
  0xc3   :  { %122 = vrsqrt.f32 %v98_v42 }
  0xcd   :  { %v123_v44 = vpop.eup %122 }
  0xce   :  { %v102_v45 = vmul.f32 %v123_v44, %v100_v43 }
  0xd0   :  { %103 = vst.msk [vmem:[%s222_s3] sm:$0xf] %vm36_vm1, %v102_v45  ;;  %v104_v47 = vmul.f32 %v102_v45, %v92_v36 }
  0xd2   :  { %v105_v48 = vsub.f32 %v101_v46, %v104_v47 }
  0xd4   :  { %106 = vst.msk [vmem:[%s223_s4] sm:$0xf] %vm36_vm1, %v105_v48 }
  0xd5   :  { %115 = vsyncpa [#allocation5], 1 }

</bundles_post_ra>
